<compile_context>
chip_gen: v7x
topology: tpu7x:2x2x1
jax: 0.10.0
libtpu: 0.0.40
codegen_flags: <defaults>
</compile_context>

<pallas_src>
import jax
import jax.numpy as jnp
from jax.experimental import pallas as pl
from jax.experimental.pallas import tpu as pltpu


_TARGET_BLOCK_BYTES = 2 << 20    # ~2 MiB per feature block (in + out => ~4 MiB,
                                 # double-buffered => ~8 MiB of pipeline buffers)
_VMEM_LIMIT_BYTES = 32 << 20     # > v5e's 16 MiB scoped default, <= v7x's 64 MiB physical


def _dim_kernel(f_ref, m_ref, o_ref):
    # f_ref: (t_r, t_hw)  feature tile (rows -> sublanes, spatial -> lanes)
    # m_ref: (t_r, 1)     per-(batch, channel) modulation scalar, f32
    # o_ref: (t_r, t_hw)
    f = f_ref[...].astype(jnp.float32)
    m = m_ref[...]
    att = jax.nn.sigmoid(f * m)                  # broadcast over the lane axis
    o_ref[...] = (att * f).astype(o_ref.dtype)


def _pick_tiles(rows, hw_pad, itemsize, pack):
    """Pick (row_tile, spatial_tile).

    row_tile: a multiple of the sublane pack that divides `rows` (or the full
    extent if rows is not pack-aligned -- always legal).
    spatial_tile: largest multiple of 128 dividing hw_pad that keeps the
    feature block near _TARGET_BLOCK_BYTES, then halved if the grid would be
    too small to feed both v7x TensorCores.
    """
    t_r = pack if rows % pack == 0 else rows

    n128 = hw_pad // 128
    max_mult = max(1, _TARGET_BLOCK_BYTES // (t_r * itemsize * 128))
    max_mult = min(max_mult, n128)
    t_mult = 1
    for m in range(max_mult, 0, -1):
        if n128 % m == 0:
            t_mult = m
            break
    t_hw = t_mult * 128

    # If spatial is small, grow the row tile to fill the byte budget instead.
    while (rows % (2 * t_r) == 0
           and 2 * t_r * t_hw * itemsize <= _TARGET_BLOCK_BYTES):
        t_r *= 2

    # Keep at least a handful of grid steps for megacore / multi-TC sharding.
    def steps(thw):
        return (rows // t_r if rows % t_r == 0 else 1) * (hw_pad // thw)

    while steps(t_hw) < 4 and t_hw >= 256 and (t_hw // 2) % 128 == 0:
        t_hw //= 2

    return t_r, t_hw


def denoise_interactive_modulation(feature, modulation_vector, weight):
    """feature: (B, C, H, W), modulation_vector: (B, D), weight: (C, D)
    (PyTorch nn.Linear weight layout)."""
    B, C, H, W = feature.shape
    HW = H * W
    rows = B * C

    # Hoisted linear projection (no bias): mod[b, c] = sum_d v[b, d] * W[c, d]
    mod = (modulation_vector.astype(jnp.float32)
           @ weight.astype(jnp.float32).T)               # (B, C), f32
    mod = mod.reshape(rows, 1)

    f_flat = feature.reshape(rows, HW)

    # Pad the spatial axis to a lane-dense multiple of 128 (unmasked vst, tile
    # size stays under our control even for odd image sizes).
    hw_pad = ((HW + 127) // 128) * 128
    if hw_pad != HW:
        f_flat = jnp.pad(f_flat, ((0, 0), (0, hw_pad - HW)))

    pack = 16 if feature.dtype.itemsize == 2 else 8
    t_r, t_hw = _pick_tiles(rows, hw_pad, feature.dtype.itemsize, pack)
    grid = (pl.cdiv(rows, t_r), hw_pad // t_hw)

    out = pl.pallas_call(
        _dim_kernel,
        out_shape=jax.ShapeDtypeStruct((rows, hw_pad), feature.dtype),
        grid_spec=pltpu.PrefetchScalarGridSpec(
            num_scalar_prefetch=0,
            grid=grid,
            in_specs=[
                # feature tile: one (t_r, t_hw) slab per (row-tile, spatial-tile)
                pl.BlockSpec((t_r, t_hw), lambda r, s: (r, s)),
                # per-row modulation column, revisited across spatial tiles
                pl.BlockSpec((t_r, 1), lambda r, s: (r, 0)),
            ],
            out_specs=pl.BlockSpec((t_r, t_hw), lambda r, s: (r, s)),
        ),
        compiler_params=pltpu.CompilerParams(
            dimension_semantics=("parallel", "parallel"),
            vmem_limit_bytes=_VMEM_LIMIT_BYTES),
    )(f_flat, mod)

    if hw_pad != HW:
        out = out[:, :HW]
    return out.reshape(B, C, H, W)


def _reference(feature, modulation_vector, weight):
    mod = modulation_vector @ weight.T                       # (B, C)
    att = jax.nn.sigmoid(feature * mod[:, :, None, None])
    return att * feature


if __name__ == "__main__":
    key = jax.random.PRNGKey(0)
    k1, k2, k3 = jax.random.split(key, 3)

    B, C, H, W = 2, 4, 16, 16      # feature_channel = 4
    D = 32                         # vector_dim = 32

    feature = jax.random.normal(k1, (B, C, H, W), dtype=jnp.float32)
    modulation_vector = jax.random.normal(k2, (B, D), dtype=jnp.float32)
    # nn.Linear(vector_dim, feature_channel, bias=False).weight has shape (C, D)
    weight = (jax.random.uniform(k3, (C, D), dtype=jnp.float32) - 0.5) * (2.0 / jnp.sqrt(D))

    out = denoise_interactive_modulation(feature, modulation_vector, weight)
    out = jax.block_until_ready(out)

    ref = _reference(feature, modulation_vector, weight)
    assert out.shape == (B, C, H, W)
    assert jnp.allclose(out, ref, atol=1e-5, rtol=1e-5), "mismatch vs reference"

    print("KERNEL_OK")
</pallas_src>

<mosaic_0001>
module attributes {stable_mosaic.version = 11 : i64} {
  func.func @_dim_kernel(%arg0: i32, %arg1: i32, %arg2: memref<8x128xf32, #tpu.memory_space<vmem>>, %arg3: memref<8x1xf32, #tpu.memory_space<vmem>>, %arg4: memref<8x128xf32, #tpu.memory_space<vmem>>) attributes {dimension_semantics = [#tpu.dimension_semantics<parallel>, #tpu.dimension_semantics<parallel>], iteration_bounds = array<i64: 1, 2>, scalar_prefetch = 0 : i64, scratch_operands = 0 : i64, tpu.core_type = #tpu.core_type<tc>, window_params = [{transform_indices = @transform_0, window_bounds = array<i64: 8, 128>}, {transform_indices = @transform_1, window_bounds = array<i64: 8, 1>}, {transform_indices = @transform_2, window_bounds = array<i64: 8, 128>}]} {
    %c0 = arith.constant 0 : index
    %c0_0 = arith.constant 0 : index
    %0 = vector.load %arg2[%c0, %c0_0] : memref<8x128xf32, #tpu.memory_space<vmem>>, vector<8x128xf32>
    %c0_1 = arith.constant 0 : index
    %c0_2 = arith.constant 0 : index
    %1 = vector.load %arg3[%c0_1, %c0_2] : memref<8x1xf32, #tpu.memory_space<vmem>>, vector<8x1xf32>
    %2 = vector.broadcast %1 : vector<8x1xf32> to vector<8x128xf32>
    %3 = arith.mulf %0, %2 : vector<8x128xf32>
    %4 = arith.negf %3 : vector<8x128xf32>
    %5 = math.exp %4 : vector<8x128xf32>
    %cst = arith.constant 1.000000e+00 : f32
    %6 = vector.broadcast %cst : f32 to vector<8x128xf32>
    %7 = arith.addf %6, %5 : vector<8x128xf32>
    %8 = arith.divf %6, %7 : vector<8x128xf32>
    %9 = arith.mulf %8, %0 : vector<8x128xf32>
    %c0_3 = arith.constant 0 : index
    %c0_4 = arith.constant 0 : index
    %10 = vector.load %arg4[%c0_3, %c0_4] : memref<8x128xf32, #tpu.memory_space<vmem>>, vector<8x128xf32>
    tpu.vector_store %arg4[%c0_3, %c0_4], %9 {strides = array<i32>} : memref<8x128xf32, #tpu.memory_space<vmem>>, vector<8x128xf32>,
    return
  }
  func.func @transform_0(%arg0: i32, %arg1: i32) -> (i32, i32) {
    %c0_i32 = arith.constant 0 : i32
    return %arg0, %arg1 : i32, i32
  }
  func.func @transform_1(%arg0: i32, %arg1: i32) -> (i32, i32) {
    %c0_i32 = arith.constant 0 : i32
    %c0_i32_0 = arith.constant 0 : i32
    return %arg0, %c0_i32 : i32, i32
  }
  func.func @transform_2(%arg0: i32, %arg1: i32) -> (i32, i32) {
    %c0_i32 = arith.constant 0 : i32
    return %arg0, %arg1 : i32, i32
  }
}

</mosaic_0001>

<bundles_post_ra>
// kernel: tpu_custom_call.1
= control target key start
LH: loop header
LB: loop body
LE: loop exit
PB: predicated region body
PF: predicated region fallthrough
CT: control target
= control target key end

     0   :  { %7 = vsyncpa [#allocation3], 0  ;;  %s713_s0 = inlined_call_operand.hbm [shape: f32[8,256], index: 0, kind: input, shape index: {}]   ;;  %s714_s1 = inlined_call_operand.vmem [shape: f32[8,1], index: 1, kind: input, shape index: {}]   ;;  %s715_s2 = inlined_call_operand.hbm [shape: f32[8,256], index: 2, kind: output, shape index: {}]  }
   0x1   :  { %9 = vsyncpa [#allocation3 + $0x1], 0 }
   0x2   :  { %10 = vsyncpa [#allocation4], 0 }
   0x3   :  { %12 = vsyncpa [#allocation4 + $0x1], 0  ;;  %s538_s9 = smov 0   ;;  %s540_s10 = smov 0  }
   0x4   :  { %s542_s11 = smov 0   ;;  %s544_s12 = smov 0  }
   0x5   :  { %s546_s13 = smov 0   ;;  %s548_s14 = smov 0  }
   0x6 LB: > { %s323_s15 = sadd.s32 4294967295, %s518_s14   ;;  %s324_s16 = sadd.s32 4294967294, %s518_s14   ;;  %s518_s14 = sphi %s548_s14, %s18_s14   ;;  %s514_s13 = sphi %s546_s13, %s731_s13   ;;  %s510_s12 = sphi %s544_s12, %s730_s12   ;;  %s506_s11 = sphi %s542_s11, %s729_s11   ;;  %s502_s10 = sphi %s540_s10, %s728_s10   ;;  %s498_s9 = sphi %s538_s9, %s727_s9  }
   0x7   : > { %s27_s17 = sadd.s32 1, %s514_s13  ;;  %s39_s18 = sadd.s32 1, %s506_s11 }
   0x8   : > { %p28_p0 = scmp.ge.s32.totalorder %s27_s17, 2  ;;  %p46_p1 = scmp.ne.s32.totalorder %s506_s11, %s502_s10 }
   0x9   : > { %p47_p2 = scmp.eq.s32.totalorder %s518_s14, 0  ;;  %p52_p3 = scmp.ne.s32.totalorder %s502_s10, %s498_s9 }
   0xa   : > { %s733_s17 = smov (%p28_p0, %s27_s17), 0  ;;  %p53_p5 = scmp.eq.s32.totalorder %s323_s15, 0 }
   0xb   : > { %p579_p4 = por %p47_p2, %p46_p1  ;;  %s35_s20 = ssub.s32 %s514_s13, %s733_s17 }
   0xc   : > { %p104_p6 = scmp.eq.s32.totalorder %s323_s15, 1  ;;  %p37_p7 = scmp.eq.s32.totalorder %s35_s20, 0 }
   0xd   : > { %p585_p8 = por %p53_p5, %p52_p3  ;;  %p110_p10 = scmp.eq.s32.totalorder %s324_s16, 1 }
   0xe   : > { %p589_p9 = por %p104_p6, %p46_p1  ;;  %p350_p13 = scmp.lt.s32.totalorder %s518_s14, 2 }
   0xf   : > { %s594_s23 = scalar_select %p37_p7, %s506_s11, %s39_s18  }
  0x10   : > { %s719_s22 = scalar_select %p589_p9, 1, 0 }
  0x11   : > { %p596_p11 = por %p110_p10, %p52_p3  ;;  %s137_s25 = sand.u32 1, %s506_s11  }
  0x12   : > { %s328_s26 = sshll.u32 %s137_s25, 3  ;;  %s329_s27 = sshll.u32 %s514_s13, 7 }
  0x13   : > { %s720_s24 = scalar_select %p596_p11, 1, 0 }
  0x14   : > { %s607_s30 = scalar_lea.hbm %s713_s0, %s329_s27  ;;  %s141_s3 = scalar_lea.vmem [#allocation2], %s328_s26 }
  0x15   : > { %s150_s4 = sshll.u32 %s141_s3, 4  ;;  %p613_p0 = pnand %p350_p13, %p579_p4  ;;  %s609_s4 = int_to_ptr.vmem [resolvable:$true] %s150_s4 }
  0x16   : > { %s138_s6 = scalar_lea.sflag [#allocation3], %s137_s25  ;;  %s406_s7 = scalar_lea.hbm %s607_s30, 128 }
  0x17   : > { %p407_p3 = scmp.ne.s32.totalorder %s607_s30, %s406_s7  ;;  %p408_p5 = pneg %p613_p0 }
  0x18   : > { %s411_s16 = scalar_lea.hbm %s713_s0, 256  ;;  %p412_p4 = scmp.lt.u32.totalorder %s607_s30, %s713_s0 }
  0x19   : > { %p409_p6 = pnand %p408_p5, %p407_p3  ;;  %p413_p10 = scmp.lt.u32.totalorder %s411_s16, %s406_s7 }
  0x1a   : > { %p415_p12 = scmp.lt.u32.totalorder %s406_s7, %s607_s30 }
  0x1b   : > { %p410_p7 = pneg %p409_p6  ;;  %p414_p13 = por %p413_p10, %p412_p4 }
  0x1d   : > { %p416_p1 = por %p415_p12, %p414_p13 }
  0x1f   : > { %p417_p2 = pnand %p416_p1, %p410_p7 }
  0x21   : > { %420 = shalt.err (!%p417_p2)
}
  0x22   : > { %s421_s20 = scalar_lea.vmem %s609_s4, 128  ;;  %s520_s25 = smov [#allocation2]  }
  0x23   : > { %p422_p3 = scmp.ne.s32.totalorder %s609_s4, %s421_s20  ;;  %s426_s26 = sshll.u32 %s520_s25, 4  ;;  %s427_s26 = int_to_ptr.vmem [resolvable:$false] %s426_s26 }
  0x24   : > { %s428_s27 = scalar_lea.vmem %s427_s26, 256  ;;  %p429_p9 = scmp.lt.s32.totalorder %s609_s4, %s427_s26 }
  0x25   : > { %p424_p6 = pnand %p422_p3, %p408_p5  ;;  %p430_p4 = scmp.lt.s32.totalorder %s428_s27, %s421_s20 }
  0x27   : > { %p425_p11 = pneg %p424_p6  ;;  %p431_p10 = por %p430_p4, %p429_p9 }
  0x29   : > { %p432_p12 = pnand %p431_p10, %p425_p11 }
  0x2b   : > { %435 = shalt.err (!%p432_p12)
}
  0x2c   : > { %345 = dma.hbm_to_vmem [thread:$0]  (!%p613_p0), %s607_s30, 128, %s609_s4, %s138_s6  }
  0x2d   : > { %p722_p1 = scmp.lt.s32.totalorder %s518_s14, 3  ;;  %p723_p2 = scmp.ge.s32.totalorder %s518_s14, 1 }
  0x2f   : > { %p156_p5 = pnand %p723_p2, %p722_p1 }
  0x30   : > { %s649_s28 = sand.u32 (!%p156_p5), 1, %s502_s10  }
  0x31   : > { %159 = sbr.rel (%p156_p5) target bundleno = 231 (0xe7), region = 28  ;;  %s331_s29 = sshll.u32 (!%p156_p5), %s649_s28, 3 }
  0x32   : > { %s162_s3 = scalar_lea.sflag (!%p156_p5), [#allocation3], %s649_s28  ;;  %s165_s7 = scalar_lea.vmem (!%p156_p5), [#allocation2], %s331_s29 }
  0x38   : > { %489 = dma.done.wait (%p585_p8), %s162_s3, 128  }
  0x39   : > { %491 = vsyncadd (%p585_p8), %s162_s3, 4294967168  ;;  %v521_v0 = vmov 0   ;;  %v195_v1 = vld [vmem:[%s714_s1] sm:$0xff]  ;;  %s335_s21 = sshll.u32 %s510_s12, 7  ;;  %s189_s5 = scalar_lea.vmem [#allocation5], %s331_s29 }
  0x3a   : > { %401 = vset.pattern.permute.xlu0 %v521_v0  ;;  %v194_v2 = vld [vmem:[%s165_s7] sm:$0xff]  ;;  %s226_s6 = sshll.u32 %s189_s5, 4  ;;  %s664_s16 = scalar_lea.hbm %s715_s2, %s335_s21  ;;  %s666_s6 = int_to_ptr.vmem [resolvable:$true] %s226_s6 }
  0x3b   : > { %198 = vperm.xlu0 %401, %v195_v1   ;;  %s211_s18 = scalar_lea.sflag [#allocation4], %s649_s28  ;;  %s436_s19 = scalar_lea.vmem %s666_s6, 128 }
  0x3c   : > { %p437_p8 = scmp.ne.s32.totalorder %s666_s6, %s436_s19  ;;  %p724_p9 = scmp.ne.s32.totalorder %s719_s22, 0 }
  0x3d   : > { %s522_s12 = smov [#allocation5]  }
  0x3e   : > { %p438_p11 = pnand %p437_p8, %p724_p9  ;;  %s440_s20 = sshll.u32 %s522_s12, 4  ;;  %s441_s20 = int_to_ptr.vmem [resolvable:$false] %s440_s20 }
  0x3f   : > { %s442_s25 = scalar_lea.vmem %s441_s20, 256  ;;  %p443_p7 = scmp.lt.s32.totalorder %s666_s6, %s441_s20 }
  0x40   : > { %p439_p0 = pneg %p438_p11  ;;  %p444_p13 = scmp.lt.s32.totalorder %s442_s25, %s436_s19 }
  0x42   : > { %p445_p3 = por %p444_p13, %p443_p7 }
  0x44   : > { %p446_p6 = pnand %p445_p3, %p439_p0 }
  0xba   : > { %v199_v3 = vpop.permute.xlu0 %198 }
  0xbb   : > { %v201_v4 = vmul.f32 %v199_v3, %v194_v2 }
  0xbd   : > { %v333_v5 = vmul.f32 -1.442695, %v201_v4 }
  0xbf   : > { %402 = vpow2.f32 %v333_v5 }
  0xc9   : > { %v403_v6 = vpop.eup %402 }
  0xca   : > { %v205_v7 = vadd.f32 1.0, %v403_v6 }
  0xcc   : > { %404 = vrcp.f32 %v205_v7 }
  0xd6   : > { %v405_v8 = vpop.eup %404 }
  0xd7   : > { %v208_v9 = vmul.f32 %v405_v8, %v194_v2 }
  0xd9   : > { %209 = vst [vmem:[%s189_s5] sm:$0xff] %v208_v9 }
  0xda   : > { %449 = shalt.err (!%p446_p6)
}
  0xdb   : > { %s450_s26 = scalar_lea.hbm %s664_s16, 128  ;;  %s454_s29 = scalar_lea.hbm %s715_s2, 256 }
  0xdc   : > { %p451_p4 = scmp.ne.s32.totalorder %s664_s16, %s450_s26  ;;  %p455_p1 = scmp.lt.u32.totalorder %s664_s16, %s715_s2 }
  0xdd   : > { %p456_p2 = scmp.lt.u32.totalorder %s454_s29, %s450_s26  ;;  %p458_p8 = scmp.lt.u32.totalorder %s450_s26, %s664_s16 }
  0xde   : > { %p452_p10 = pnand %p451_p4, %p724_p9 }
  0xdf   : > { %p457_p5 = por %p456_p2, %p455_p1 }
  0xe0   : > { %p453_p12 = pneg %p452_p10 }
  0xe1   : > { %p459_p11 = por %p458_p8, %p457_p5 }
  0xe3   : > { %p460_p0 = pnand %p459_p11, %p453_p12 }
  0xe5   : > { %463 = shalt.err (!%p460_p0)
}
  0xe6   : > { %340 = dma.vmem_to_hbm [thread:$0]  (%p724_p9), %s666_s6, 128, %s664_s16, %s211_s18  }
  0xe7 PF: > { %s238_s30 = sand.u32 1, %s498_s9   ;;  %p725_p7 = scmp.ne.s32.totalorder %s720_s24, 0 }
  0xe8   : > { %p726_p13 = scmp.ge.s32.totalorder %s518_s14, 2  ;;  %s239_s4 = scalar_lea.sflag [#allocation4], %s238_s30 }
  0xea   : > { %p347_p3 = pnand %p726_p13, %p725_p7 }
  0xec   : > { %493 = dma.done.wait (!%p347_p3), %s239_s4, 128  }
  0xed   : > { %495 = vsyncadd (!%p347_p3), %s239_s4, 4294967168  ;;  %s18_s14 = sadd.s32 1, %s518_s14   ;;  %s727_s9 = smov %s502_s10 }
  0xee   : > { %p15_p6 = scmp.ge.s32.totalorder %s18_s14, 4   ;;  %s728_s10 = smov %s506_s11 }
  0xef   : > { %s729_s11 = smov %s594_s23  ;;  %s730_s12 = smov %s514_s13 }
  0xf0   : > { %s731_s13 = smov %s733_s17  ;;  %17 = sbr.rel (!%p15_p6) target bundleno = 6 (0x6), region = 76 }
  0xf7   :  { %244 = vsyncpa [#allocation3], 1 }
  0xf8   :  { %246 = vsyncpa [#allocation3 + $0x1], 1 }
  0xf9   :  { %247 = vsyncpa [#allocation4], 1 }
  0xfa   :  { %249 = vsyncpa [#allocation4 + $0x1], 1 }

</bundles_post_ra>
